<compile_context>
chip_gen: v6e
topology: v6e:2x2x1
jax: 0.10.0
libtpu: 0.0.40
codegen_flags: <defaults>
</compile_context>

<pallas_src>
import jax
import jax.numpy as jnp
from jax import lax
from jax.experimental import pallas as pl
from jax.experimental.pallas import tpu as pltpu


def _round_up(x, m):
    return (x + m - 1) // m * m


def encoding_view_kernel(flags_ref, fidx_ref, xbf_ref, xres_ref, adj_ref, dinv_ref,
                         wgnn_ref, w1_ref, b1_ref, o_ref):
    """Grid: (row_tile i [parallel], relation view r [arbitrary, accumulator])."""
    r = pl.program_id(1)
    n_views = pl.num_programs(1)

    @pl.when(r == 0)
    def _init():
        o_ref[...] = jnp.zeros_like(o_ref)

    has_edges = flags_ref[r] != 0                    # SMEM scalar (prefetched)

    @pl.when(has_edges)
    def _gnn_branch():
        x_bf = xbf_ref[...]                          # (Np, Hp) bf16, grid-invariant
        m_fw = adj_ref[0, 0]                         # (TM, Np) bf16 0/1, diag-zeroed
        m_bw = adj_ref[0, 1]                         # (TM, Np) bf16, pre-transposed
        inv_fw = dinv_ref[0, 0]                      # (TM, 1) f32, exact 1/deg
        inv_bw = dinv_ref[0, 1]

        # Mean aggregation on the MXU in bf16, f32 accumulation; per-row normalize.
        agg_fw = jnp.dot(m_fw, x_bf, preferred_element_type=jnp.float32) * inv_fw
        agg_bw = jnp.dot(m_bw, x_bf, preferred_element_type=jnp.float32) * inv_bw

        # Block-diagonal projection fusion: the bw / fw weights occupy disjoint
        # output-column ranges ([0:H/2] / [H/2:H]), so the sum of two lane-dense
        # matmuls reproduces concat([bw_out, fw_out], -1) with no concat.
        pre = (jnp.dot(agg_bw.astype(jnp.bfloat16), wgnn_ref[0, 0],
                       preferred_element_type=jnp.float32) +
               jnp.dot(agg_fw.astype(jnp.bfloat16), wgnn_ref[0, 1],
                       preferred_element_type=jnp.float32))
        o_ref[...] += jnp.maximum(pre, 0.0)          # GNN activation (ReLU)

    @pl.when(jnp.logical_not(has_edges))
    def _passthrough_branch():
        o_ref[...] += xres_ref[...]                  # dropout(inps) == inps in eval

    @pl.when(r == n_views - 1)
    def _finalize():
        s = jnp.maximum(o_ref[...], 0.0).astype(jnp.bfloat16)   # act(sum over views)
        o_ref[...] = (jnp.dot(s, w1_ref[...], preferred_element_type=jnp.float32)
                      + b1_ref[...] + xres_ref[...])             # linear1 + residual


def encoding_view_forward(candidate_embs, relation_probs, w_fw, w_bw, w1, b1):
    """candidate_embs: [N, H]; relation_probs: [N, N, R];
       w_fw/w_bw: [R, H, H//2]; w1: [H, H] (stored [in, out]); b1: [H]."""
    N, H = candidate_embs.shape
    R = relation_probs.shape[-1]
    Hh = H // 2

    # Lane-dense feature padding: 128-exact fills v5e's MXU; for larger H, 256
    # alignment fills the 256-wide v6e/v7x MXUs.
    Hp = 128 if H <= 128 else _round_up(H, 256)
    Np8 = _round_up(N, 8)
    TM = Np8 if Np8 <= 512 else 512      # row tile capped for v7x's 64 MiB VMEM
    Np = _round_up(Np8, TM)
    num_tiles = Np // TM

    f32, bf16 = jnp.float32, jnp.bfloat16

    x_pad = jnp.zeros((Np, Hp), f32).at[:N, :H].set(candidate_embs.astype(f32))
    xbf_pad = x_pad.astype(bf16)         # hoisted x->bf16 cast (grid-invariant input)

    # Pre-binarize + zero diagonal + pre-transpose in the wrapper; stream bf16 (0/1
    # exact).  Stacked fw/bw: [R, 2, Np, Np].
    eye = jnp.eye(N, dtype=bool)
    p_rnn = jnp.transpose(relation_probs.astype(f32), (2, 0, 1))        # [R, N, N]
    m_fw_b = jnp.logical_and(p_rnn != 0.0, ~eye[None, :, :])            # bool
    m_bw_b = jnp.transpose(m_fw_b, (0, 2, 1))
    m_stack = jnp.stack([m_fw_b, m_bw_b], axis=1)                       # [R, 2, N, N]
    adj_pad = jnp.zeros((R, 2, Np, Np), bf16).at[:, :, :N, :N].set(m_stack.astype(bf16))

    # Exact degree reciprocals (f32, O(N) per view) -> no in-kernel reductions.
    deg = jnp.maximum(jnp.sum(m_stack.astype(f32), axis=-1, keepdims=True), 1.0)
    dinv_pad = jnp.ones((R, 2, Np, 1), f32).at[:, :, :N, :].set(1.0 / deg)

    # Per-view "has any off-diagonal edge" flag, plus fetch_idx[r] = index of the
    # last non-empty view <= r so empty views repeat the previous block index and
    # Pallas elides their adjacency / degree / weight DMAs entirely.
    view_flags = jnp.any(m_fw_b, axis=(1, 2)).astype(jnp.int32)         # [R]
    idx = jnp.arange(R, dtype=jnp.int32)
    fetch_idx = jnp.maximum(
        lax.cummax(jnp.where(view_flags > 0, idx, -1)), 0).astype(jnp.int32)

    # Merged per-view GNN projection weights, bf16, on disjoint output-column ranges
    # (bw -> [0:Hh], fw -> [Hh:H]): one streamed tensor instead of two.
    wgnn = jnp.zeros((R, 2, Hp, Hp), bf16)
    wgnn = wgnn.at[:, 0, :H, :Hh].set(w_bw.astype(bf16))
    wgnn = wgnn.at[:, 1, :H, Hh:H].set(w_fw.astype(bf16))

    w1_pad = jnp.zeros((Hp, Hp), bf16).at[:H, :H].set(w1.astype(bf16))   # bf16 finalize
    b1_pad = jnp.zeros((1, Hp), f32).at[0, :H].set(b1.astype(f32))

    out_pad = pl.pallas_call(
        encoding_view_kernel,
        out_shape=jax.ShapeDtypeStruct((Np, Hp), f32),
        grid_spec=pltpu.PrefetchScalarGridSpec(
            num_scalar_prefetch=2,
            grid=(num_tiles, R),
            in_specs=[
                # grid-invariant embeddings (bf16, aggregation RHS)
                pl.BlockSpec((Np, Hp), lambda i, r, fl, fi: (0, 0)),
                # row-tiled f32 embeddings (empty-view passthrough + residual)
                pl.BlockSpec((TM, Hp), lambda i, r, fl, fi: (i, 0)),
                # fw/bw binarized adjacency row tile (DMA elided on empty views)
                pl.BlockSpec((1, 2, TM, Np), lambda i, r, fl, fi: (fi[r], 0, i, 0)),
                # fw/bw exact degree reciprocals
                pl.BlockSpec((1, 2, TM, 1), lambda i, r, fl, fi: (fi[r], 0, i, 0)),
                # merged per-view GNN projection weights
                pl.BlockSpec((1, 2, Hp, Hp), lambda i, r, fl, fi: (fi[r], 0, 0, 0)),
                # linear1 weight (bf16) / bias (f32), grid-invariant
                pl.BlockSpec((Hp, Hp), lambda i, r, fl, fi: (0, 0)),
                pl.BlockSpec((1, Hp), lambda i, r, fl, fi: (0, 0)),
            ],
            out_specs=pl.BlockSpec((TM, Hp), lambda i, r, fl, fi: (i, 0)),
        ),
        compiler_params=pltpu.CompilerParams(
            # row-tile axis feeds both v7x TensorCores; the view axis carries the
            # resident output accumulator.
            dimension_semantics=("parallel", "arbitrary"),
            # Explicit scoped-VMEM budget: above the 16/32 MiB v5e/v6e defaults,
            # below v7x's 64 MiB physical VMEM.
            vmem_limit_bytes=48 * 1024 * 1024),
    )(view_flags, fetch_idx, xbf_pad, x_pad, adj_pad, dinv_pad, wgnn, w1_pad, b1_pad)

    return out_pad[:N, :H]


def encoding_view_reference(candidate_embs, relation_probs, w_fw, w_bw, w1, b1):
    """Pure-JAX f32 reference mirroring the module semantics."""
    N, H = candidate_embs.shape
    R = relation_probs.shape[-1]
    x = candidate_embs.astype(jnp.float32)
    eye = jnp.eye(N, dtype=bool)
    acc = jnp.zeros((N, H), jnp.float32)
    for r in range(R):
        A = jnp.where(eye, 0.0, relation_probs[:, :, r])
        has_edges = jnp.any(A != 0.0)
        A_bin = (A != 0.0).astype(jnp.float32)
        deg_fw = jnp.maximum(A_bin.sum(-1, keepdims=True), 1.0)
        deg_bw = jnp.maximum(A_bin.T.sum(-1, keepdims=True), 1.0)
        fw_out = jnp.maximum((A_bin @ x) / deg_fw @ w_fw[r], 0.0)
        bw_out = jnp.maximum((A_bin.T @ x) / deg_bw @ w_bw[r], 0.0)
        gnn_out = jnp.concatenate([bw_out, fw_out], axis=-1)
        acc = acc + jnp.where(has_edges, gnn_out, x)
    feats = jnp.maximum(acc, 0.0) @ w1 + b1
    return feats + x


if __name__ == "__main__":
    N, H, R = 8, 32, 3          # nodes (candidate spans), hidden size, relation types
    Hh = H // 2

    key = jax.random.PRNGKey(0)
    k_emb, k_p, k_fw, k_bw, k_w1, k_b1 = jax.random.split(key, 6)

    candidate_embs = jax.random.normal(k_emb, (N, H), jnp.float32)
    relation_probs = jax.random.uniform(k_p, (N, N, R), jnp.float32)
    # Make the last relation view all-zero to exercise the empty-edge branch
    # (and the fetch_idx DMA-elision path).
    relation_probs = relation_probs.at[:, :, R - 1].set(0.0)

    # Deterministic synthetic parameters (module __init__ shapes).
    w_fw = 0.05 * jax.random.normal(k_fw, (R, H, Hh), jnp.float32)
    w_bw = 0.05 * jax.random.normal(k_bw, (R, H, Hh), jnp.float32)
    w1 = 0.05 * jax.random.normal(k_w1, (H, H), jnp.float32)   # stored as [in, out]
    b1 = 0.01 * jax.random.normal(k_b1, (H,), jnp.float32)

    out = encoding_view_forward(candidate_embs, relation_probs, w_fw, w_bw, w1, b1)
    out = jax.block_until_ready(out)

    ref = encoding_view_reference(candidate_embs, relation_probs, w_fw, w_bw, w1, b1)
    assert out.shape == (N, H)
    # Tolerance accounts for bf16 aggregation / projection / linear1 matmuls
    # (f32 accumulation throughout); degree reciprocals are exact f32.
    assert jnp.allclose(out, ref, rtol=2e-2, atol=2e-2)

    print("KERNEL_OK")
</pallas_src>

<mosaic_0001>
module attributes {stable_mosaic.version = 11 : i64} {
  func.func @encoding_view_kernel(%arg0: i32, %arg1: i32, %arg2: memref<3xi32, #tpu.memory_space<smem>>, %arg3: memref<3xi32, #tpu.memory_space<smem>>, %arg4: memref<8x128xbf16, #tpu.memory_space<vmem>>, %arg5: memref<8x128xf32, #tpu.memory_space<vmem>>, %arg6: memref<1x2x8x8xbf16, #tpu.memory_space<vmem>>, %arg7: memref<1x2x8x1xf32, #tpu.memory_space<vmem>>, %arg8: memref<1x2x128x128xbf16, #tpu.memory_space<vmem>>, %arg9: memref<128x128xbf16, #tpu.memory_space<vmem>>, %arg10: memref<1x128xf32, #tpu.memory_space<vmem>>, %arg11: memref<8x128xf32, #tpu.memory_space<vmem>>) attributes {dimension_semantics = [#tpu.dimension_semantics<parallel>, #tpu.dimension_semantics<arbitrary>], iteration_bounds = array<i64: 1, 3>, scalar_prefetch = 2 : i64, scratch_operands = 0 : i64, tpu.core_type = #tpu.core_type<tc>, window_params = [{pipeline_mode = #tpu.pipeline_mode<synchronous>, transform_indices = @transform_0, window_bounds = array<i64: 8, 128>}, {transform_indices = @transform_1, window_bounds = array<i64: 8, 128>}, {transform_indices = @transform_2, window_bounds = array<i64: 1, 2, 8, 8>}, {transform_indices = @transform_3, window_bounds = array<i64: 1, 2, 8, 1>}, {transform_indices = @transform_4, window_bounds = array<i64: 1, 2, 128, 128>}, {pipeline_mode = #tpu.pipeline_mode<synchronous>, transform_indices = @transform_5, window_bounds = array<i64: 128, 128>}, {pipeline_mode = #tpu.pipeline_mode<synchronous>, transform_indices = @transform_6, window_bounds = array<i64: 1, 128>}, {transform_indices = @transform_7, window_bounds = array<i64: 8, 128>}]} {
    %c0_i32 = arith.constant 0 : i32
    %0 = arith.cmpi eq, %arg1, %c0_i32 : i32
    %1 = arith.extui %0 : i1 to i32
    %c0_i32_0 = arith.constant 0 : i32
    %2 = arith.cmpi ne, %1, %c0_i32_0 : i32
    scf.if %2 {
      %cst = arith.constant 0.000000e+00 : f32
      %14 = vector.broadcast %cst : f32 to vector<8x128xf32>
      %c0 = arith.constant 0 : index
      %c0_5 = arith.constant 0 : index
      %15 = vector.load %arg11[%c0, %c0_5] : memref<8x128xf32, #tpu.memory_space<vmem>>, vector<8x128xf32>
      tpu.vector_store %arg11[%c0, %c0_5], %14 {strides = array<i32>} : memref<8x128xf32, #tpu.memory_space<vmem>>, vector<8x128xf32>,
    } else {
    }
    %3 = arith.index_cast %arg1 : i32 to index
    %4 = memref.load %arg2[%3] : memref<3xi32, #tpu.memory_space<smem>>
    %c0_i32_1 = arith.constant 0 : i32
    %5 = arith.cmpi ne, %4, %c0_i32_1 : i32
    %6 = arith.extui %5 : i1 to i32
    %c0_i32_2 = arith.constant 0 : i32
    %7 = arith.cmpi ne, %6, %c0_i32_2 : i32
    scf.if %7 {
      %c0 = arith.constant 0 : index
      %c0_5 = arith.constant 0 : index
      %14 = vector.load %arg4[%c0, %c0_5] : memref<8x128xbf16, #tpu.memory_space<vmem>>, vector<8x128xbf16>
      %c0_6 = arith.constant 0 : index
      %c0_7 = arith.constant 0 : index
      %c0_8 = arith.constant 0 : index
      %c0_9 = arith.constant 0 : index
      %15 = vector.load %arg6[%c0_6, %c0_7, %c0_8, %c0_9] : memref<1x2x8x8xbf16, #tpu.memory_space<vmem>>, vector<1x1x8x8xbf16>
      %16 = vector.shape_cast %15 : vector<1x1x8x8xbf16> to vector<8x8xbf16>
      %c0_10 = arith.constant 0 : index
      %c1 = arith.constant 1 : index
      %c0_11 = arith.constant 0 : index
      %c0_12 = arith.constant 0 : index
      %17 = vector.load %arg6[%c0_10, %c1, %c0_11, %c0_12] : memref<1x2x8x8xbf16, #tpu.memory_space<vmem>>, vector<1x1x8x8xbf16>
      %18 = vector.shape_cast %17 : vector<1x1x8x8xbf16> to vector<8x8xbf16>
      %c0_13 = arith.constant 0 : index
      %c0_14 = arith.constant 0 : index
      %c0_15 = arith.constant 0 : index
      %c0_16 = arith.constant 0 : index
      %19 = vector.load %arg7[%c0_13, %c0_14, %c0_15, %c0_16] : memref<1x2x8x1xf32, #tpu.memory_space<vmem>>, vector<1x1x8x1xf32>
      %20 = vector.shape_cast %19 : vector<1x1x8x1xf32> to vector<8x1xf32>
      %c0_17 = arith.constant 0 : index
      %c1_18 = arith.constant 1 : index
      %c0_19 = arith.constant 0 : index
      %c0_20 = arith.constant 0 : index
      %21 = vector.load %arg7[%c0_17, %c1_18, %c0_19, %c0_20] : memref<1x2x8x1xf32, #tpu.memory_space<vmem>>, vector<1x1x8x1xf32>
      %22 = vector.shape_cast %21 : vector<1x1x8x1xf32> to vector<8x1xf32>
      %cst = arith.constant dense<0.000000e+00> : vector<8x128xf32>
      %23 = tpu.matmul %16, %14, %cst {dimension_numbers = #tpu.dot_dimension_numbers<[1], [0], [0], [1], [0, 0, 1, 1], [], []>} : vector<8x8xbf16>, vector<8x128xbf16>, vector<8x128xf32> -> vector<8x128xf32>
      %24 = vector.broadcast %20 : vector<8x1xf32> to vector<8x128xf32>
      %25 = arith.mulf %23, %24 : vector<8x128xf32>
      %cst_21 = arith.constant dense<0.000000e+00> : vector<8x128xf32>
      %26 = tpu.matmul %18, %14, %cst_21 {dimension_numbers = #tpu.dot_dimension_numbers<[1], [0], [0], [1], [0, 0, 1, 1], [], []>} : vector<8x8xbf16>, vector<8x128xbf16>, vector<8x128xf32> -> vector<8x128xf32>
      %27 = vector.broadcast %22 : vector<8x1xf32> to vector<8x128xf32>
      %28 = arith.mulf %26, %27 : vector<8x128xf32>
      %29 = arith.truncf %28 : vector<8x128xf32> to vector<8x128xbf16>
      %c0_22 = arith.constant 0 : index
      %c0_23 = arith.constant 0 : index
      %c0_24 = arith.constant 0 : index
      %c0_25 = arith.constant 0 : index
      %30 = vector.load %arg8[%c0_22, %c0_23, %c0_24, %c0_25] : memref<1x2x128x128xbf16, #tpu.memory_space<vmem>>, vector<1x1x128x128xbf16>
      %31 = vector.shape_cast %30 : vector<1x1x128x128xbf16> to vector<128x128xbf16>
      %cst_26 = arith.constant dense<0.000000e+00> : vector<8x128xf32>
      %32 = tpu.matmul %29, %31, %cst_26 {dimension_numbers = #tpu.dot_dimension_numbers<[1], [0], [0], [1], [0, 0, 1, 1], [], []>} : vector<8x128xbf16>, vector<128x128xbf16>, vector<8x128xf32> -> vector<8x128xf32>
      %33 = arith.truncf %25 : vector<8x128xf32> to vector<8x128xbf16>
      %c0_27 = arith.constant 0 : index
      %c1_28 = arith.constant 1 : index
      %c0_29 = arith.constant 0 : index
      %c0_30 = arith.constant 0 : index
      %34 = vector.load %arg8[%c0_27, %c1_28, %c0_29, %c0_30] : memref<1x2x128x128xbf16, #tpu.memory_space<vmem>>, vector<1x1x128x128xbf16>
      %35 = vector.shape_cast %34 : vector<1x1x128x128xbf16> to vector<128x128xbf16>
      %cst_31 = arith.constant dense<0.000000e+00> : vector<8x128xf32>
      %36 = tpu.matmul %33, %35, %cst_31 {dimension_numbers = #tpu.dot_dimension_numbers<[1], [0], [0], [1], [0, 0, 1, 1], [], []>} : vector<8x128xbf16>, vector<128x128xbf16>, vector<8x128xf32> -> vector<8x128xf32>
      %37 = arith.addf %32, %36 : vector<8x128xf32>
      %c0_32 = arith.constant 0 : index
      %c0_33 = arith.constant 0 : index
      %38 = vector.load %arg11[%c0_32, %c0_33] : memref<8x128xf32, #tpu.memory_space<vmem>>, vector<8x128xf32>
      %cst_34 = arith.constant 0.000000e+00 : f32
      %39 = vector.broadcast %cst_34 : f32 to vector<8x128xf32>
      %40 = arith.maximumf %37, %39 : vector<8x128xf32>
      %41 = arith.addf %38, %40 : vector<8x128xf32>
      %c0_35 = arith.constant 0 : index
      %c0_36 = arith.constant 0 : index
      %42 = vector.load %arg11[%c0_35, %c0_36] : memref<8x128xf32, #tpu.memory_space<vmem>>, vector<8x128xf32>
      tpu.vector_store %arg11[%c0_35, %c0_36], %41 {strides = array<i32>} : memref<8x128xf32, #tpu.memory_space<vmem>>, vector<8x128xf32>,
    } else {
    }
    %true = arith.constant true
    %8 = arith.xori %5, %true : i1
    %9 = arith.extui %8 : i1 to i32
    %c0_i32_3 = arith.constant 0 : i32
    %10 = arith.cmpi ne, %9, %c0_i32_3 : i32
    scf.if %10 {
      %c0 = arith.constant 0 : index
      %c0_5 = arith.constant 0 : index
      %14 = vector.load %arg11[%c0, %c0_5] : memref<8x128xf32, #tpu.memory_space<vmem>>, vector<8x128xf32>
      %c0_6 = arith.constant 0 : index
      %c0_7 = arith.constant 0 : index
      %15 = vector.load %arg5[%c0_6, %c0_7] : memref<8x128xf32, #tpu.memory_space<vmem>>, vector<8x128xf32>
      %16 = arith.addf %14, %15 : vector<8x128xf32>
      %c0_8 = arith.constant 0 : index
      %c0_9 = arith.constant 0 : index
      %17 = vector.load %arg11[%c0_8, %c0_9] : memref<8x128xf32, #tpu.memory_space<vmem>>, vector<8x128xf32>
      tpu.vector_store %arg11[%c0_8, %c0_9], %16 {strides = array<i32>} : memref<8x128xf32, #tpu.memory_space<vmem>>, vector<8x128xf32>,
    } else {
    }
    %c2_i32 = arith.constant 2 : i32
    %11 = arith.cmpi eq, %arg1, %c2_i32 : i32
    %12 = arith.extui %11 : i1 to i32
    %c0_i32_4 = arith.constant 0 : i32
    %13 = arith.cmpi ne, %12, %c0_i32_4 : i32
    scf.if %13 {
      %c0 = arith.constant 0 : index
      %c0_5 = arith.constant 0 : index
      %14 = vector.load %arg11[%c0, %c0_5] : memref<8x128xf32, #tpu.memory_space<vmem>>, vector<8x128xf32>
      %cst = arith.constant 0.000000e+00 : f32
      %15 = vector.broadcast %cst : f32 to vector<8x128xf32>
      %16 = arith.maximumf %14, %15 : vector<8x128xf32>
      %17 = arith.truncf %16 : vector<8x128xf32> to vector<8x128xbf16>
      %c0_6 = arith.constant 0 : index
      %c0_7 = arith.constant 0 : index
      %18 = vector.load %arg9[%c0_6, %c0_7] : memref<128x128xbf16, #tpu.memory_space<vmem>>, vector<128x128xbf16>
      %cst_8 = arith.constant dense<0.000000e+00> : vector<8x128xf32>
      %19 = tpu.matmul %17, %18, %cst_8 {dimension_numbers = #tpu.dot_dimension_numbers<[1], [0], [0], [1], [0, 0, 1, 1], [], []>} : vector<8x128xbf16>, vector<128x128xbf16>, vector<8x128xf32> -> vector<8x128xf32>
      %c0_9 = arith.constant 0 : index
      %c0_10 = arith.constant 0 : index
      %20 = vector.load %arg10[%c0_9, %c0_10] : memref<1x128xf32, #tpu.memory_space<vmem>>, vector<1x128xf32>
      %21 = vector.broadcast %20 : vector<1x128xf32> to vector<8x128xf32>
      %22 = arith.addf %19, %21 : vector<8x128xf32>
      %c0_11 = arith.constant 0 : index
      %c0_12 = arith.constant 0 : index
      %23 = vector.load %arg5[%c0_11, %c0_12] : memref<8x128xf32, #tpu.memory_space<vmem>>, vector<8x128xf32>
      %24 = arith.addf %22, %23 : vector<8x128xf32>
      %c0_13 = arith.constant 0 : index
      %c0_14 = arith.constant 0 : index
      %25 = vector.load %arg11[%c0_13, %c0_14] : memref<8x128xf32, #tpu.memory_space<vmem>>, vector<8x128xf32>
      tpu.vector_store %arg11[%c0_13, %c0_14], %24 {strides = array<i32>} : memref<8x128xf32, #tpu.memory_space<vmem>>, vector<8x128xf32>,
    } else {
    }
    return
  }
  func.func @transform_0(%arg0: i32, %arg1: i32, %arg2: memref<3xi32, #tpu.memory_space<smem>>, %arg3: memref<3xi32, #tpu.memory_space<smem>>) -> (i32, i32) {
    %c0_i32 = arith.constant 0 : i32
    %c0_i32_0 = arith.constant 0 : i32
    %c0_i32_1 = arith.constant 0 : i32
    return %c0_i32, %c0_i32_0 : i32, i32
  }
  func.func @transform_1(%arg0: i32, %arg1: i32, %arg2: memref<3xi32, #tpu.memory_space<smem>>, %arg3: memref<3xi32, #tpu.memory_space<smem>>) -> (i32, i32) {
    %c0_i32 = arith.constant 0 : i32
    %c0_i32_0 = arith.constant 0 : i32
    return %arg0, %c0_i32 : i32, i32
  }
  func.func @transform_2(%arg0: i32, %arg1: i32, %arg2: memref<3xi32, #tpu.memory_space<smem>>, %arg3: memref<3xi32, #tpu.memory_space<smem>>) -> (i32, i32, i32, i32) {
    %0 = arith.index_cast %arg1 : i32 to index
    %1 = memref.load %arg3[%0] : memref<3xi32, #tpu.memory_space<smem>>
    %c0_i32 = arith.constant 0 : i32
    %c0_i32_0 = arith.constant 0 : i32
    %c0_i32_1 = arith.constant 0 : i32
    return %1, %c0_i32, %arg0, %c0_i32_0 : i32, i32, i32, i32
  }
  func.func @transform_3(%arg0: i32, %arg1: i32, %arg2: memref<3xi32, #tpu.memory_space<smem>>, %arg3: memref<3xi32, #tpu.memory_space<smem>>) -> (i32, i32, i32, i32) {
    %0 = arith.index_cast %arg1 : i32 to index
    %1 = memref.load %arg3[%0] : memref<3xi32, #tpu.memory_space<smem>>
    %c0_i32 = arith.constant 0 : i32
    %c0_i32_0 = arith.constant 0 : i32
    %c0_i32_1 = arith.constant 0 : i32
    return %1, %c0_i32, %arg0, %c0_i32_0 : i32, i32, i32, i32
  }
  func.func @transform_4(%arg0: i32, %arg1: i32, %arg2: memref<3xi32, #tpu.memory_space<smem>>, %arg3: memref<3xi32, #tpu.memory_space<smem>>) -> (i32, i32, i32, i32) {
    %0 = arith.index_cast %arg1 : i32 to index
    %1 = memref.load %arg3[%0] : memref<3xi32, #tpu.memory_space<smem>>
    %c0_i32 = arith.constant 0 : i32
    %c0_i32_0 = arith.constant 0 : i32
    %c0_i32_1 = arith.constant 0 : i32
    %c0_i32_2 = arith.constant 0 : i32
    return %1, %c0_i32, %c0_i32_0, %c0_i32_1 : i32, i32, i32, i32
  }
  func.func @transform_5(%arg0: i32, %arg1: i32, %arg2: memref<3xi32, #tpu.memory_space<smem>>, %arg3: memref<3xi32, #tpu.memory_space<smem>>) -> (i32, i32) {
    %c0_i32 = arith.constant 0 : i32
    %c0_i32_0 = arith.constant 0 : i32
    %c0_i32_1 = arith.constant 0 : i32
    return %c0_i32, %c0_i32_0 : i32, i32
  }
  func.func @transform_6(%arg0: i32, %arg1: i32, %arg2: memref<3xi32, #tpu.memory_space<smem>>, %arg3: memref<3xi32, #tpu.memory_space<smem>>) -> (i32, i32) {
    %c0_i32 = arith.constant 0 : i32
    %c0_i32_0 = arith.constant 0 : i32
    %c0_i32_1 = arith.constant 0 : i32
    return %c0_i32, %c0_i32_0 : i32, i32
  }
  func.func @transform_7(%arg0: i32, %arg1: i32, %arg2: memref<3xi32, #tpu.memory_space<smem>>, %arg3: memref<3xi32, #tpu.memory_space<smem>>) -> (i32, i32) {
    %c0_i32 = arith.constant 0 : i32
    %c0_i32_0 = arith.constant 0 : i32
    return %arg0, %c0_i32 : i32, i32
  }
}

</mosaic_0001>

<bundles_post_ra>
// kernel: tpu_custom_call.1
= control target key start
LH: loop header
LB: loop body
LE: loop exit
PB: predicated region body
PF: predicated region fallthrough
CT: control target
= control target key end

     0   :  { %s2063_s0 = inlined_call_operand.vmem [shape: s32[3], index: 0, kind: input, shape index: {}]   ;;  %s2064_s2 = inlined_call_operand.hbm [shape: bf16[8,128], index: 2, kind: input, shape index: {}]   ;;  %s2065_s3 = inlined_call_operand.hbm [shape: f32[8,128], index: 3, kind: input, shape index: {}]   ;;  %s2066_s4 = inlined_call_operand.hbm [shape: bf16[3,2,8,8], index: 4, kind: input, shape index: {}]   ;;  %s2067_s5 = inlined_call_operand.vmem [shape: f32[3,2,8,1], index: 5, kind: input, shape index: {}]   ;;  %s2068_s6 = inlined_call_operand.hbm [shape: bf16[3,2,128,128], index: 6, kind: input, shape index: {}]   ;;  %s2069_s7 = inlined_call_operand.vmem [shape: bf16[128,128], index: 7, kind: input, shape index: {}]   ;;  %s2070_s8 = inlined_call_operand.vmem [shape: f32[1,128], index: 8, kind: input, shape index: {}]   ;;  %s2071_s9 = inlined_call_operand.hbm [shape: f32[8,128], index: 9, kind: output, shape index: {}]   ;;  %s2072_s1 = inlined_call_operand.vmem [shape: s32[3], index: 1, kind: input, shape index: {}]  }
   0x1   :  { %2084 = sst [smem:[#allocation25_spill]] %s2064_s2  ;;  %s14_s11 = sshll.u32 %s2063_s0, 4  ;;  %s15_s11 = int_to_ptr.vmem [resolvable:$true] %s14_s11 }
   0x2   :  { %2085 = sst [smem:[#allocation26_spill]] %s2067_s5  ;;  %s18_s14 = sshll.u32 %s2072_s1, 4  ;;  %s19_s14 = int_to_ptr.vmem [resolvable:$true] %s18_s14 }
   0x3   :  { %2086 = sst [smem:[#allocation27_spill]] %s2069_s7  ;;  %s1358_s15 = scalar_lea.vmem %s15_s11, 16 }
   0x4   :  { %2087 = sst [smem:[#allocation28_spill]] %s2070_s8  ;;  %p1359_p0 = scmp.ne.s32.totalorder %s15_s11, %s1358_s15 }
   0x5   :  { %2088 = sst [smem:[#allocation29_spill]] %s2071_s9  ;;  %p1363_p1 = scmp.lt.s32.totalorder %s15_s11, %s15_s11 }
   0x6   :  { %p1364_p2 = scmp.lt.s32.totalorder %s1358_s15, %s1358_s15 }
   0x8   :  { %p1365_p3 = por %p1364_p2, %p1363_p1 }
   0xa   :  { %p1366_p4 = pnand %p1365_p3, %p1359_p0 }
   0xc   :  { %1369 = shalt.err (!%p1366_p4)  }
   0xd   :  { %s1608_s16 = smov [#allocation3]   ;;  %s1370_s17 = scalar_lea.vmem %s19_s14, 16 }
   0xe   :  { %17 = dma.vmem_to_smem %s15_s11, 16, %s1608_s16, [#allocation2] }
   0xf   :  { %p1371_p5 = scmp.ne.s32.totalorder %s19_s14, %s1370_s17  ;;  %p1375_p6 = scmp.lt.s32.totalorder %s19_s14, %s19_s14 }
  0x10   :  { %p1376_p7 = scmp.lt.s32.totalorder %s1370_s17, %s1370_s17 }
  0x12   :  { %p1377_p8 = por %p1376_p7, %p1375_p6 }
  0x14   :  { %p1378_p9 = pnand %p1377_p8, %p1371_p5 }
  0x16   :  { %1381 = shalt.err (!%p1378_p9)  }
  0x17   :  { %s1609_s0 = smov [#allocation4]  }
  0x18   :  { %21 = dma.vmem_to_smem %s19_s14, 16, %s1609_s0, [#allocation2] }
  0x19   :  { %1550 = dma.done.wait [#allocation2], 32 }
  0x1a   :  { %1551 = vsyncadd [#allocation2], 4294967264 }
  0x1b   :  { %23 = sfence }
  0x1c   :  { %24 = vsyncpa [#allocation6], 0 }
  0x1d   :  { %25 = vsyncpa [#allocation9], 0 }
  0x1e   :  { %26 = vsyncpa [#allocation7], 0  ;;  %s1679_s1 = smov 0   ;;  %s1681_s18 = smov 0  }
  0x1f   :  { %s1683_s19 = smov 0   ;;  %s1685_s20 = smov 0  }
  0x20   :  { %s1687_s21 = smov 0   ;;  %s1689_s22 = smov 0  }
  0x21   :  { %s1691_s23 = smov 0   ;;  %s1693_s24 = smov 0  }
  0x22   :  { %s1695_s25 = smov 0  }
  0x23 LB: > { %2089 = sst [smem:[#allocation23_spill]] %s1598_s23  ;;  %s1721_s26 = sadd.s32 4294967295, %s1606_s25   ;;  %s1606_s25 = sphi %s1695_s25, %s32_s25   ;;  %s1602_s24 = sphi %s1693_s24, %s2129_s24   ;;  %s1598_s23 = sphi %s1691_s23, %s2128_s23   ;;  %s1594_s22 = sphi %s1689_s22, %s2127_s22   ;;  %s1590_s21 = sphi %s1687_s21, %s2126_s21   ;;  %s1586_s20 = sphi %s1685_s20, %s2125_s20   ;;  %s1582_s19 = sphi %s1683_s19, %s2124_s19   ;;  %s1578_s18 = sphi %s1681_s18, %s2123_s18   ;;  %s1574_s1 = sphi %s1679_s1, %s2122_s1  }
  0x24   : > { %p115_p10 = scmp.ne.s32.totalorder %s1590_s21, %s1586_s20  ;;  %p2077_p11 = scmp.eq.s32.totalorder %s1721_s26, 0 }
  0x25   : > { %p173_p12 = scmp.ne.s32.totalorder %s1578_s18, %s1574_s1  ;;  %p1027_p13 = scmp.ge.s32.totalorder %s1606_s25, 1 }
  0x26   : > { %p252_p0 = scmp.lt.s32.totalorder %s1606_s25, 4  ;;  %p1730_p1 = por %p2077_p11, %p115_p10 }
  0x27   : > { %p1736_p2 = por %p173_p12, %p2077_p11  ;;  %s1610_s30 = smov [#allocation5]  }
  0x28   : > { %s2090_s27 = scalar_select %p1730_p1, 1, 0 }
  0x29   : > { %s2091_s28 = scalar_select %p1736_p2, 1, 0 }
  0x2a   : > { %p1740_p3 = pnand %p1027_p13, %p252_p0  ;;  %s265_s10 = sshll.u32 %s1610_s30, 4  ;;  %s266_s10 = int_to_ptr.vmem [resolvable:$true] %s265_s10 }
  0x2b   : > { %2092 = sst [smem:[#allocation24_spill]] %s2091_s28  ;;  %s1393_s12 = scalar_lea.vmem %s266_s10, 64 }
  0x2c   : > { %s2093_s29 = scalar_select %p1740_p3, 1, 0 }
  0x2d   : > { %p1223_p4 = pneg %p1740_p3  ;;  %p1394_p7 = scmp.ne.s32.totalorder %s266_s10, %s1393_s12 }
  0x2e   : > { %p1401_p10 = scmp.lt.s32.totalorder %s266_s10, %s266_s10  ;;  %p1402_p12 = scmp.lt.s32.totalorder %s1393_s12, %s1393_s12 }
  0x2f   : > { %p1748_p5 = pnand %p1223_p4, %p2077_p11 }
  0x30   : > { %p1403_p13 = por %p1402_p12, %p1401_p10 }
  0x31   : > { %p1384_p6 = pneg %p1748_p5 }
  0x33   : > { %p1396_p8 = pnand %p1394_p7, %p1384_p6 }
  0x35   : > { %p1397_p9 = pneg %p1396_p8 }
  0x37   : > { %p1404_p0 = pnand %p1403_p13, %p1397_p9 }
  0x39   : > { %1407 = shalt.err (!%p1404_p0)
}
  0x3a   : > { %s2095_s2 = sld [smem:[#allocation25_spill]]  ;;  %s41_s15 = sadd.s32 1, %s1602_s24 }
  0x3b   : > { %p42_p4 = scmp.ge.s32.totalorder %s41_s15, 3  ;;  %s95_s16 = sld [smem:[#allocation4 + %s1602_s24]] }
  0x3c   : > { %p109_p7 = scmp.ne.s32.totalorder %s1594_s22, %s1590_s21  ;;  %p2078_p8 = scmp.eq.s32.totalorder %s1606_s25, 0 }
  0x3d   : > { %s2131_s15 = smov (%p42_p4, %s41_s15), 0  ;;  %p2080_p9 = scmp.lt.s32.totalorder %s1606_s25, 3 }
  0x3e   : > { %p1772_p10 = por %p2078_p8, %p109_p7  ;;  %s96_s0 = sld [smem:[#allocation4 + %s2131_s15]] }
  0x3f   : > { %s102_s20 = sadd.s32 1, %s1594_s22  ;;  %s297_s30 = sand.u32 1, %s1594_s22  }
  0x40   : > { %1226 = dma.hbm_to_vmem [thread:$0]  (!%p1748_p5), %s2095_s2, 64, %s266_s10, [#allocation6]  }
  0x41   : > { %s1781_s10 = sld [smem:[#allocation4 + %s1602_s24]]  ;;  %s1031_s12 = sshll.u32 %s297_s30, 3 }
  0x42   : > { %p1787_p12 = pnand %p2080_p9, %p1772_p10  ;;  %s299_s30 = scalar_lea.vmem [#allocation10], %s1031_s12 }
  0x43   : > { %s1207_s14 = scalar_select %p1772_p10, [#allocation4], [#allocation13] }
  0x44   : > { %s1208_s2 = scalar_select %p1772_p10, %s1602_s24, 0 }
  0x45   : > { %s97_s9 = ssub.s32 %s95_s16, %s96_s0  ;;  %s2133_s14 = smov (!%p2080_p9, %s1207_s14), [#allocation15] }
  0x46   : > { %p100_p13 = scmp.eq.s32.totalorder %s97_s9, 0  ;;  %s2135_s2 = smov (!%p2080_p9, %s1208_s2), 0 }
  0x47   : > { %s308_s8 = sshll.u32 %s299_s30, 4  ;;  %s300_s7 = sld [smem:[%s2133_s14 + %s2135_s2]]  ;;  %s1811_s8 = int_to_ptr.vmem [resolvable:$true] %s308_s8 }
  0x48   : > { %s1799_s1 = scalar_select %p100_p13, %s1594_s22, %s102_s20  }
  0x49   : > { %s1611_s5 = smov [#allocation8]  }
  0x4a   : > { %s278_s23 = sshll.u32 %s1611_s5, 4  ;;  %s279_s23 = int_to_ptr.vmem [resolvable:$true] %s278_s23 }
  0x4b   : > { %s1419_s28 = scalar_lea.vmem %s279_s23, 128  ;;  %p1427_p10 = scmp.lt.s32.totalorder %s279_s23, %s279_s23 }
  0x4c   : > { %p1420_p0 = scmp.ne.s32.totalorder %s279_s23, %s1419_s28  ;;  %p1428_p11 = scmp.lt.s32.totalorder %s1419_s28, %s1419_s28 }
  0x4e   : > { %p1422_p4 = pnand %p1420_p0, %p1384_p6  ;;  %p1429_p8 = por %p1428_p11, %p1427_p10 }
  0x50   : > { %p1423_p7 = pneg %p1422_p4 }
  0x52   : > { %p1430_p2 = pnand %p1429_p8, %p1423_p7 }
  0x54   : > { %1433 = shalt.err (!%p1430_p2)
}
  0x55   : > { %1229 = dma.hbm_to_vmem [thread:$0]  (!%p1748_p5), %s2065_s3, 128, %s279_s23, [#allocation9]  }
  0x56   : > { %s1814_s2 = sld [smem:[#allocation4 + %s2131_s15]]  ;;  %p167_p11 = scmp.ne.s32.totalorder %s1582_s19, %s1578_s18 }
  0x57   : > { %s1097_s5 = sshll.u32 %s300_s7, 7  ;;  %s333_s28 = sand.u32 1, %s1582_s19  }
  0x58   : > { %s1822_s0 = scalar_lea.hbm %s2066_s4, %s1097_s5  ;;  %p2098_p2 = scmp.eq.s32.totalorder %s1606_s25, 0 }
  0x59   : > { %s2100_s23 = sand.u32 1, %s1606_s25   ;;  %s1434_s14 = scalar_lea.hbm %s1822_s0, 128 }
  0x5a   : > { %p1826_p6 = por %p167_p11, %p2098_p2  ;;  %s1832_s12 = scalar_lea.sflag [#allocation6], %s2100_s23 }
  0x5b   : > { %p1435_p5 = scmp.ne.s32.totalorder %s1822_s0, %s1434_s14  ;;  %p1436_p8 = pneg %p1787_p12 }
  0x5c   : > { %s2099_s20 = scalar_select %p1826_p6, 1, 0 }
  0x5d   : > { %p1437_p13 = pnand %p1436_p8, %p1435_p5  ;;  %s1439_s9 = scalar_lea.hbm %s2066_s4, 384 }
  0x5e   : > { %p1440_p4 = scmp.lt.s32.totalorder %s1822_s0, %s2066_s4  ;;  %p1441_p7 = scmp.lt.s32.totalorder %s1439_s9, %s1434_s14 }
  0x5f   : > { %p1438_p0 = pneg %p1437_p13 }
  0x60   : > { %p1442_p10 = por %p1441_p7, %p1440_p4 }
  0x62   : > { %p1443_p11 = pnand %p1442_p10, %p1438_p0 }
  0x64   : > { %1446 = shalt.err (!%p1443_p11)
}
  0x65   : > { %s1447_s17 = scalar_lea.vmem %s1811_s8, 128  ;;  %s1612_s11 = smov [#allocation10]  }
  0x66   : > { %p1448_p2 = scmp.ne.s32.totalorder %s1811_s8, %s1447_s17  ;;  %s1452_s23 = sshll.u32 %s1612_s11, 4  ;;  %s1453_s23 = int_to_ptr.vmem [resolvable:$false] %s1452_s23 }
  0x67   : > { %s1454_s7 = scalar_lea.vmem %s1453_s23, 256  ;;  %p1455_p13 = scmp.lt.s32.totalorder %s1811_s8, %s1453_s23 }
  0x68   : > { %p1450_p9 = pnand %p1448_p2, %p1436_p8  ;;  %p1456_p1 = scmp.lt.s32.totalorder %s1454_s7, %s1447_s17 }
  0x6a   : > { %p1451_p5 = pneg %p1450_p9  ;;  %p1457_p3 = por %p1456_p1, %p1455_p13 }
  0x6c   : > { %p1458_p6 = pnand %p1457_p3, %p1451_p5 }
  0x6e   : > { %1461 = shalt.err (!%p1458_p6)
}
  0x6f   : > { %s1613_s14 = smov 64   ;;  %s1614_s30 = smov 4  }
  0x70   : > { %1235 = dma.hbm_to_vmem [thread:$0]  (!%p1787_p12), %s1822_s0, 128, %s1811_s8, %s1832_s12, %s1613_s14, %s1613_s14, %s1614_s30  }
  0x71   : > { %s160_s9 = sadd.s32 1, %s1582_s19  ;;  %s157_s16 = ssub.s32 %s1781_s10, %s1814_s2 }
  0x72   : > { %s1034_s5 = sshll.u32 %s333_s28, 7  ;;  %p158_p1 = scmp.eq.s32.totalorder %s157_s16, 0 }
  0x73   : > { %p2101_p3 = scmp.ne.s32.totalorder %s2099_s20, 0  ;;  %p2102_p9 = scmp.lt.s32.totalorder %s1606_s25, 3 }
  0x74   : > { %s1872_s23 = scalar_select %p158_p1, %s1582_s19, %s160_s9  }
  0x75   : > { %p1865_p6 = pnand %p2102_p9, %p2101_p3  ;;  %p2104_p8 = pmov %p2102_p9 }
  0x76   : > { %s1210_s11 = scalar_select %p2101_p3, [#allocation4], [#allocation14] }
  0x77   : > { %s1211_s13 = scalar_select %p2101_p3, %s1602_s24, 0 }
  0x78   : > { %s2137_s11 = smov (!%p2104_p8, %s1210_s11), [#allocation16]  ;;  %p2105_p12 = pmov %p2104_p8 }
  0x79   : > { %s335_s10 = scalar_lea.vmem [#allocation11], %s1034_s5  ;;  %p1464_p4 = pneg %p1865_p6 }
  0x7a   : > { %s2139_s13 = smov (!%p2105_p12, %s1211_s13), 0  ;;  %s343_s2 = sshll.u32 %s335_s10, 4  ;;  %s1881_s2 = int_to_ptr.vmem [resolvable:$true] %s343_s2 }
  0x7b   : > { %s336_s8 = sld [smem:[%s2137_s11 + %s2139_s13]]  ;;  %s1467_s11 = scalar_lea.hbm %s2068_s6, 6144 }
  0x81   : > { %s1098_s28 = sshll.u32 %s336_s8, 11 }
  0x82   : > { %s1886_s16 = scalar_lea.hbm %s2068_s6, %s1098_s28 }
  0x83   : > { %s1462_s20 = scalar_lea.hbm %s1886_s16, 2048  ;;  %p1468_p11 = scmp.lt.s32.totalorder %s1886_s16, %s2068_s6 }
  0x84   : > { %p1463_p0 = scmp.ne.s32.totalorder %s1886_s16, %s1462_s20  ;;  %p1469_p2 = scmp.lt.s32.totalorder %s1467_s11, %s1462_s20 }
  0x86   : > { %p1465_p7 = pnand %p1464_p4, %p1463_p0  ;;  %p1470_p5 = por %p1469_p2, %p1468_p11 }
  0x88   : > { %p1466_p10 = pneg %p1465_p7 }
  0x8a   : > { %p1471_p13 = pnand %p1470_p5, %p1466_p10 }
  0x8c   : > { %1474 = shalt.err (!%p1471_p13)
}
  0x8d   : > { %s1475_s10 = scalar_lea.vmem %s1881_s2, 2048  ;;  %s1615_s28 = smov [#allocation11]  }
  0x8e   : > { %p1476_p1 = scmp.ne.s32.totalorder %s1881_s2, %s1475_s10  ;;  %s1480_s0 = sshll.u32 %s1615_s28, 4  ;;  %s1481_s0 = int_to_ptr.vmem [resolvable:$false] %s1480_s0 }
  0x8f   : > { %s1482_s7 = scalar_lea.vmem %s1481_s0, 4096  ;;  %p1483_p8 = scmp.lt.s32.totalorder %s1881_s2, %s1481_s0 }
  0x90   : > { %p1478_p3 = pnand %p1476_p1, %p1464_p4  ;;  %p1484_p12 = scmp.lt.s32.totalorder %s1482_s7, %s1475_s10 }
  0x92   : > { %p1479_p9 = pneg %p1478_p3  ;;  %p1485_p0 = por %p1484_p12, %p1483_p8 }
  0x94   : > { %p1486_p7 = pnand %p1485_p0, %p1479_p9 }
  0x96   : > { %1489 = shalt.err (!%p1486_p7)
}
  0x97   : > { %1240 = dma.hbm_to_vmem [thread:$0]  (!%p1865_p6), %s1886_s16, 2048, %s1881_s2, %s1832_s12, %s1613_s14, %s1613_s14, %s1614_s30  }
  0x98   : > { %p2106_p4 = scmp.ne.s32.totalorder %s2093_s29, 0 }
  0x99   : > { %p2107_p10 = scmp.eq.s32.totalorder (!%p2106_p4), %s1721_s26, 0 }
  0x9a   : > { %355 = sbr.rel (%p2106_p4) target bundleno = 894 (0x37e), region = 48 }
  0x9f   : > { %1553 = dma.done.wait (%p2107_p10), [#allocation6], 64   ;;  %p2108_p11 = pmov %p2107_p10 }
  0xa0   : > { %p2109_p2 = pmov %p2107_p10 }
  0xa1   : > { %1555 = vsyncadd (%p2108_p11), [#allocation6], 4294967232 }
  0xa2   : > { %1557 = dma.done.wait (%p2109_p2), [#allocation9], 128   ;;  %p2110_p5 = pmov %p2109_p2 }
  0xa3   : > { %s365_s17 = sand.u32 1, %s1721_s26   ;;  %s367_s12 = sand.u32 1, %s1590_s21  }
  0xa4   : > { %1559 = vsyncadd (%p2110_p5), [#allocation9], 4294967168  ;;  %s1922_s14 = sshll.u32 %s367_s12, 3  ;;  %s366_s29 = scalar_lea.sflag [#allocation6], %s365_s17 }
  0xa5   : > { %s369_s30 = scalar_lea.vmem [#allocation10], %s1922_s14  ;;  %p2111_p6 = scmp.ne.s32.totalorder %s2090_s27, 0 }
  0xa7   : > { %1561 = dma.done.wait (%p2111_p6), %s366_s29, 128  }
  0xa8   : > { %1563 = vsyncadd (%p2111_p6), %s366_s29, 4294967168  ;;  %s2112_s2 = sld [smem:[#allocation24_spill]]  ;;  %s376_s16 = sand.u32 1, %s1578_s18  }
  0xa9   : > { %s1041_s20 = sshll.u32 %s376_s16, 7 }
  0xaa   : > { %s1930_s9 = scalar_lea.vmem [#allocation11], %s1041_s20 }
  0xae   : > { %p2113_p13 = scmp.ne.s32.totalorder %s2112_s2, 0 }
  0xb0   : > { %1565 = dma.done.wait (%p2113_p13), %s366_s29, 2048  }
  0xb1   : > { %1567 = vsyncadd (%p2113_p13), %s366_s29, 4294965248  ;;  %s2114_s5 = sld [smem:[#allocation23_spill]] }
  0xb2   : > { %s2115_s27 = sld [smem:[#allocation26_spill]] }
  0xb7   : > { %s419_s11 = sld [smem:[#allocation4 + %s2114_s5]]  ;;  %p1044_p3 = scmp.ne.s32.totalorder %s2114_s5, 0 }
  0xbd   : > { %p420_p1 = scmp.lt.s32.totalorder %s419_s11, 2  ;;  %434 = sbr.rel (%p1044_p3) target bundleno = 196 (0xc4), region = 68 }
  0xbf   : > { %s2141_s11 = smov (!%p420_p1, %s419_s11), 2 }
  0xc0   : > { %s1099_s13 = sshll.u32 %s2141_s11, 4 }
  0xc1   : > { %s1940_s28 = scalar_lea.vmem %s2115_s27, %s1099_s13 }
  0xc2   : > { %v1616_v0 = vmov 0.0  }
  0xc3   : > { %435 = vst [vmem:[#allocation12] sm:$0xff] %v1616_v0 }
  0xc4 PF: > { %s2116_s0 = sld [smem:[#allocation23_spill]] }
  0xca   : > { %s1944_s7 = sld [smem:[#allocation3 + %s2116_s0]] }
  0xd0   : > { %p1045_p9 = scmp.eq.s32.totalorder %s1944_s7, 0 }
  0xd2   : > { %440 = sbr.rel (%p1045_p9) target bundleno = 617 (0x269), region = 72 }
  0xd7   : > { %v441_v1 = vld [vmem:[#allocation5] sm:$0xf]  ;;  %vm452_vm0 = vcmask 1043456   ;;  %v1617_v2 = vmov 0.0   ;;  %v442_v4 = vld [vmem:[%s369_s30] sm:$0xf] }
  0xd8   : > { %1131 = vmatprep.subr.bf16.mxu0 %v1617_v2  ;;  %1137 = vmatprep.subr.bf16.mxu1 %v1617_v2  ;;  %v454_v3 = vsel %vm452_vm0, %v441_v1, 0  ;;  %vm448_vm1 = vcmask 64512   ;;  %v1046_v5 = vld [vmem:[%s369_s30 + $0x4] sm:$0xf]  ;;  %v445_v6 = vld [vmem:[%s1940_s28] sm:$0xff]  ;;  %vm1618_vm2 = vmmov 0  }
  0xd9   : > { %1132 = vmatpush3.bf16.msra.mxu0 %v454_v3  ;;  %1138 = vmatpush3.bf16.msra.mxu1 %v454_v3  ;;  %v1334_v7 = vld [vmem:[%s1930_s9 + $0x78] sm:$0xff]   ;;  %v1619_v8 = vmov 0   ;;  %v1047_v10 = vld [vmem:[%s1940_s28 + $0x8] sm:$0xff]  ;;  %v1340_v15 = vld [vmem:[%s1930_s9 + $0x60] sm:$0xff]  }
  0xda   : > { %1133 = vmatprep.mubr.msk.bf16.mxu0 %vm1618_vm2, %v1617_v2  ;;  %1139 = vmatprep.mubr.msk.bf16.mxu1 %vm1618_vm2, %v1617_v2  ;;  %v1335_v9 = vld [vmem:[%s1930_s9 + $0x38] sm:$0xff]   ;;  %v1336_v11 = vld [vmem:[%s1930_s9 + $0x70] sm:$0xff]   ;;  %v1338_v13 = vld [vmem:[%s1930_s9 + $0x68] sm:$0xff]  }
  0xdb   : > { %1333 = vset.pattern.permute.xlu0 %v1619_v8  ;;  %1143 = vmatprep.subr.bf16.mxu0 %v1617_v2  ;;  %v1337_v12 = vld [vmem:[%s1930_s9 + $0x30] sm:$0xff]   ;;  %v1339_v14 = vld [vmem:[%s1930_s9 + $0x28] sm:$0xff]   ;;  %v1341_v16 = vld [vmem:[%s1930_s9 + $0x20] sm:$0xff]  }
  0xdc   : > { %1134 = vmatmul.mubr.msk.bf16.vlgmr.msra.gmra.mxu0 %vm448_vm1, %v442_v4  ;;  %1140 = vmatmul.mubr.msk.bf16.vlgmr.msra.gmra.mxu1 %vm448_vm1, %v1046_v5  ;;  %v1342_v17 = vld [vmem:[%s1930_s9 + $0x58] sm:$0xff]   ;;  %v1344_v19 = vld [vmem:[%s1930_s9 + $0x50] sm:$0xff]   ;;  %v1346_v21 = vld [vmem:[%s1930_s9 + $0x48] sm:$0xff]  }
  0xdd   : > { %498 = vperm.xlu0 %1333, %v445_v6   ;;  %1163 = vmatprep.subr.bf16.mxu1 %v1617_v2  ;;  %v1343_v18 = vld [vmem:[%s1930_s9 + $0x18] sm:$0xff]   ;;  %v1345_v20 = vld [vmem:[%s1930_s9 + $0x10] sm:$0xff]   ;;  %v1347_v22 = vld [vmem:[%s1930_s9 + $0x8] sm:$0xff]  }
  0xde   : > { %1144 = vmatpush3.bf16.msra.mxu0 %v1334_v7  ;;  %1164 = vmatpush3.bf16.msra.mxu1 %v1335_v9  ;;  %v1348_v23 = vld [vmem:[%s1930_s9 + $0x40] sm:$0xff]  }
  0xdf   : > { %1145 = vmatprep.subr.bf16.mxu0 %v1617_v2  ;;  %1165 = vmatprep.subr.bf16.mxu1 %v1617_v2  ;;  %v1349_v24 = vld [vmem:[%s1930_s9] sm:$0xff]  }
  0xe0   : > { %1159 = vmatprep.mubr.msk.bf16.mxu0 %vm1618_vm2, %v1617_v2  ;;  %1179 = vmatprep.mubr.msk.bf16.mxu1 %vm1618_vm2, %v1617_v2  ;;  %v762_v42 = vld [vmem:[#allocation12] sm:$0xff] }
  0xe1   : > { %547 = vperm.xlu0 %1333, %v1047_v10  }
  0xe2   : > { %1146 = vmatpush3.bf16.msra.mxu0 %v1336_v11  ;;  %1166 = vmatpush3.bf16.msra.mxu1 %v1337_v12 }
  0xe3   : > { %1147 = vmatprep.subr.bf16.mxu0 %v1617_v2  ;;  %1167 = vmatprep.subr.bf16.mxu1 %v1617_v2 }
  0xe6   : > { %1148 = vmatpush3.bf16.msra.mxu0 %v1338_v13  ;;  %1168 = vmatpush3.bf16.msra.mxu1 %v1339_v14 }
  0xe7   : > { %1149 = vmatprep.subr.bf16.mxu0 %v1617_v2  ;;  %1169 = vmatprep.subr.bf16.mxu1 %v1617_v2 }
  0xea   : > { %1150 = vmatpush3.bf16.msra.mxu0 %v1340_v15  ;;  %1170 = vmatpush3.bf16.msra.mxu1 %v1341_v16 }
  0xeb   : > { %1151 = vmatprep.subr.bf16.mxu0 %v1617_v2  ;;  %1171 = vmatprep.subr.bf16.mxu1 %v1617_v2 }
  0xee   : > { %1152 = vmatpush3.bf16.msra.mxu0 %v1342_v17  ;;  %1172 = vmatpush3.bf16.msra.mxu1 %v1343_v18 }
  0xef   : > { %1153 = vmatprep.subr.bf16.mxu0 %v1617_v2  ;;  %1173 = vmatprep.subr.bf16.mxu1 %v1617_v2 }
  0xf2   : > { %1154 = vmatpush3.bf16.msra.mxu0 %v1344_v19  ;;  %1174 = vmatpush3.bf16.msra.mxu1 %v1345_v20 }
  0xf3   : > { %1155 = vmatprep.subr.bf16.mxu0 %v1617_v2  ;;  %1175 = vmatprep.subr.bf16.mxu1 %v1617_v2 }
  0xf6   : > { %1156 = vmatpush3.bf16.msra.mxu0 %v1346_v21  ;;  %1176 = vmatpush3.bf16.msra.mxu1 %v1347_v22 }
  0xf7   : > { %1157 = vmatprep.subr.bf16.mxu0 %v1617_v2  ;;  %1177 = vmatprep.subr.bf16.mxu1 %v1617_v2 }
  0xfa   : > { %1158 = vmatpush3.bf16.msra.mxu0 %v1348_v23  ;;  %1178 = vmatpush3.bf16.msra.mxu1 %v1349_v24 }
 0x158   : > { %v499_v25 = vpop.permute.xlu0 %498 }
 0x15c   : > { %v548_v26 = vpop.permute.xlu0 %547 }
 0x19c   : > { %v490_v27 = vpop.f32.mrf.mxu0  ;;  %v539_v28 = vpop.f32.mrf.mxu1 }
 0x19d   : > { %v501_v29 = vmul.f32 %v499_v25, %v490_v27  ;;  %v550_v30 = vmul.f32 %v548_v26, %v539_v28 }
 0x19e   : > { %v1135_v31 = vpop.f32.mrf.mxu0  ;;  %v1141_v32 = vpop.f32.mrf.mxu1 }
 0x19f   : > { %v568_v33 = vpack.c.bf16 %v501_v29, %v501_v29  ;;  %v551_v34 = vpack.c.bf16 %v550_v30, %v550_v30 }
 0x1a0   : > { %v493_v35 = vpop.f32.mrf.mxu0  ;;  %v542_v36 = vpop.f32.mrf.mxu1 }
 0x1a1   : > { %1160 = vmatmul.mubr.bf16.vlgmr.msra.gmra.mxu0 %v568_v33  ;;  %1180 = vmatmul.mubr.bf16.vlgmr.msra.gmra.mxu1 %v551_v34 }
 0x1a2   : > { %v1136_v37 = vpop.f32.mrf.mxu0  ;;  %v1142_v38 = vpop.f32.mrf.mxu1 }
 0x261   : > { %v668_v39 = vpop.f32.mrf.mxu0  ;;  %v756_v40 = vpop.f32.mrf.mxu1 }
 0x262   : > { %v757_v41 = vadd.f32 %v756_v40, %v668_v39 }
 0x263   : > { %v1161_v43 = vpop.f32.mrf.mxu0  ;;  %v1181_v44 = vpop.f32.mrf.mxu1 }
 0x264   : > { %v763_v45 = vmax.f32 %v757_v41, 0.0 }
 0x265   : > { %v671_v46 = vpop.f32.mrf.mxu0  ;;  %v759_v47 = vpop.f32.mrf.mxu1 }
 0x266   : > { %v764_v48 = vadd.f32 %v763_v45, %v762_v42 }
 0x267   : > { %v1162_v49 = vpop.f32.mrf.mxu0  ;;  %v1182_v50 = vpop.f32.mrf.mxu1 }
 0x268   : > { %765 = vst [vmem:[#allocation12] sm:$0xff] %v764_v48 }
 0x269 PF: > { %p1082_p8 = scmp.ne.s32.totalorder %s1944_s7, 0 }
 0x26b   : > { %769 = sbr.rel (%p1082_p8) target bundleno = 628 (0x274), region = 76 }
 0x270   : > { %v770_v51 = vld [vmem:[#allocation12] sm:$0xff]  ;;  %v771_v52 = vld [vmem:[#allocation8] sm:$0xff] }
 0x271   : > { %v772_v53 = vadd.f32 %v771_v52, %v770_v51 }
 0x273   : > { %773 = vst [vmem:[#allocation12] sm:$0xff] %v772_v53 }
 0x274 PF: > { %s2117_s17 = sld [smem:[#allocation23_spill]] }
 0x27a   : > { %p1083_p12 = scmp.ne.s32.totalorder %s2117_s17, 2 }
 0x27b   : > { %s2118_s29 = sld [smem:[#allocation27_spill]] (!%p1083_p12) }
 0x27c   : > { %777 = sbr.rel (%p1083_p12) target bundleno = 873 (0x369), region = 80  ;;  %s2119_s14 = sld [smem:[#allocation28_spill]] (!%p1083_p12) }
 0x281   : > { %v1350_v54 = vld [vmem:[%s2118_s29 + $0x38] sm:$0xff]   ;;  %v1620_v55 = vmov 0.0   ;;  %v1351_v56 = vld [vmem:[%s2118_s29 + $0x30] sm:$0xff]   ;;  %vm1621_vm3 = vmmov 0   ;;  %v1352_v57 = vld [vmem:[%s2118_s29 + $0x28] sm:$0xff]  }
 0x282   : > { %1183 = vmatprep.subr.bf16.mxu0 %v1620_v55  ;;  %1199 = vmatprep.mubr.msk.bf16.mxu0 %vm1621_vm3, %v1620_v55  ;;  %v1353_v58 = vld [vmem:[%s2118_s29 + $0x20] sm:$0xff]   ;;  %v1354_v59 = vld [vmem:[%s2118_s29 + $0x18] sm:$0xff]   ;;  %v1355_v60 = vld [vmem:[%s2118_s29 + $0x10] sm:$0xff]  }
 0x283   : > { %1184 = vmatpush3.bf16.msra.mxu0 %v1350_v54  ;;  %v1356_v61 = vld [vmem:[%s2118_s29 + $0x8] sm:$0xff]   ;;  %v778_v62 = vld [vmem:[#allocation12] sm:$0xff] }
 0x284   : > { %1185 = vmatprep.subr.bf16.mxu0 %v1620_v55  ;;  %v779_v63 = vmax.f32 %v778_v62, 0.0  ;;  %v1357_v0 = vld [vmem:[%s2118_s29] sm:$0xff]  }
 0x285   : > { %v1084_v2 = vld [vmem:[%s2119_s14] ss:$0 sm:$0xff]  ;;  %v892_v4 = vld [vmem:[#allocation8] sm:$0xff] }
 0x286   : > { %v780_v1 = vpack.c.bf16 %v779_v63, %v779_v63 }
 0x287   : > { %1186 = vmatpush3.bf16.msra.mxu0 %v1351_v56 }
 0x288   : > { %1187 = vmatprep.subr.bf16.mxu0 %v1620_v55 }
 0x28b   : > { %1188 = vmatpush3.bf16.msra.mxu0 %v1352_v57 }
 0x28c   : > { %1189 = vmatprep.subr.bf16.mxu0 %v1620_v55 }
 0x28f   : > { %1190 = vmatpush3.bf16.msra.mxu0 %v1353_v58 }
 0x290   : > { %1191 = vmatprep.subr.bf16.mxu0 %v1620_v55 }
 0x293   : > { %1192 = vmatpush3.bf16.msra.mxu0 %v1354_v59 }
 0x294   : > { %1193 = vmatprep.subr.bf16.mxu0 %v1620_v55 }
 0x297   : > { %1194 = vmatpush3.bf16.msra.mxu0 %v1355_v60 }
 0x298   : > { %1195 = vmatprep.subr.bf16.mxu0 %v1620_v55 }
 0x29b   : > { %1196 = vmatpush3.bf16.msra.mxu0 %v1356_v61 }
 0x29c   : > { %1197 = vmatprep.subr.bf16.mxu0 %v1620_v55 }
 0x29f   : > { %1198 = vmatpush3.bf16.msra.mxu0 %v1357_v0 }
 0x2a2   : > { %1200 = vmatmul.mubr.bf16.vlgmr.msra.gmra.mxu0 %v780_v1 }
 0x362   : > { %v886_v3 = vpop.f32.mrf.mxu0 }
 0x363   : > { %v887_v5 = vadd.f32 %v1084_v2, %v886_v3 }
 0x364   : > { %v1201_v6 = vpop.f32.mrf.mxu0 }
 0x365   : > { %v893_v7 = vadd.f32 %v892_v4, %v887_v5 }
 0x366   : > { %v889_v8 = vpop.f32.mrf.mxu0 }
 0x367   : > { %894 = vst [vmem:[#allocation12] sm:$0xff] %v893_v7 }
 0x368   : > { %v1202_v9 = vpop.f32.mrf.mxu0 }
 0x369 PF: > { %p1246_p0 = scmp.eq.s32.totalorder %s1721_s26, 2  ;;  %s1622_s30 = smov [#allocation12]  }
 0x36a   : > { %s904_s2 = sshll.u32 %s1622_s30, 4  ;;  %s905_s2 = int_to_ptr.vmem [resolvable:$true] %s904_s2 }
 0x36b   : > { %s1490_s16 = scalar_lea.vmem %s905_s2, 128  ;;  %p1497_p11 = scmp.lt.s32.totalorder %s905_s2, %s905_s2 }
 0x36c   : > { %p1491_p7 = scmp.ne.s32.totalorder %s905_s2, %s1490_s16  ;;  %p1498_p2 = scmp.lt.s32.totalorder %s1490_s16, %s1490_s16 }
 0x36e   : > { %p1492_p4 = pnand %p1491_p7, %p1246_p0  ;;  %p1499_p5 = por %p1498_p2, %p1497_p11 }
 0x370   : > { %p1493_p10 = pneg %p1492_p4 }
 0x372   : > { %p1500_p6 = pnand %p1499_p5, %p1493_p10 }
 0x374   : > { %1503 = shalt.err (!%p1500_p6)
}
 0x375   : > { %s2120_s5 = sld [smem:[#allocation29_spill]] }
 0x37b   : > { %1220 = dma.vmem_to_hbm [thread:$0]  (%p1246_p0), %s905_s2, 128, %s2120_s5, [#allocation7]  }
 0x37c   : > { %1569 = dma.done.wait (%p1246_p0), [#allocation7], 128  }
 0x37d   : > { %1571 = vsyncadd (%p1246_p0), [#allocation7], 4294967168 }
 0x37e PF: > { %s32_s25 = sadd.s32 1, %s1606_s25   ;;  %s2121_s11 = smov %s1799_s1 }
 0x37f   : > { %p29_p13 = scmp.ge.s32.totalorder %s32_s25, 5   ;;  %s2122_s1 = smov %s1578_s18 }
 0x380   : > { %s2123_s18 = smov %s1582_s19  ;;  %s2124_s19 = smov %s1872_s23 }
 0x381   : > { %s2125_s20 = smov %s1590_s21  ;;  %s2126_s21 = smov %s1594_s22 }
 0x382   : > { %s2127_s22 = smov %s2121_s11  ;;  %s2128_s23 = smov %s1602_s24 }
 0x383   : > { %s2129_s24 = smov %s2131_s15  ;;  %31 = sbr.rel (!%p29_p13) target bundleno = 35 (0x23), region = 127 }
 0x388   :  { %917 = vsyncpa [#allocation6], 1 }
 0x389   :  { %919 = vsyncpa [#allocation6 + $0x1], 1 }
 0x38a   :  { %920 = vsyncpa [#allocation9], 1 }
 0x38b   :  { %921 = vsyncpa [#allocation7], 1 }
 0x38c   :  { %923 = vsyncpa [#allocation7 + $0x1], 1 }

</bundles_post_ra>
